<compile_context>
chip_gen: v6e
topology: v6e:2x2x1
jax: 0.10.0
libtpu: 0.0.40
codegen_flags: <defaults>
</compile_context>

<pallas_src>
from functools import partial
from math import sqrt

import jax
import jax.numpy as jnp
from jax import lax
from jax.experimental import pallas as pl
from jax.experimental.pallas import tpu as pltpu


_LANE = 128
_MASK_VALUE = -1e30  # large finite negative: NaN-safe for online softmax


def _round_up(n, m):
    return ((n + m - 1) // m) * m


# --------------------------------------------------------------------------
# Kernel 1: fused Q/K/V projection (Q pre-scaled by 1/sqrt(d_k)).
# Refs (leading batch dim squeezed): x (bs, Dm); weights (Dm, Dout) transposed.
# --------------------------------------------------------------------------
def _proj_kernel(x_ref, wq_ref, wk_ref, wv_ref, q_ref, k_ref, v_ref, *, scale):
    x = x_ref[...]                                           # (bs, Dm)
    q = jnp.dot(x, wq_ref[...], preferred_element_type=jnp.float32)
    k = jnp.dot(x, wk_ref[...], preferred_element_type=jnp.float32)
    v = jnp.dot(x, wv_ref[...], preferred_element_type=jnp.float32)
    q_ref[...] = (q * scale).astype(q_ref.dtype)
    k_ref[...] = k.astype(k_ref.dtype)
    v_ref[...] = v.astype(v_ref.dtype)


# --------------------------------------------------------------------------
# Kernel 2: causal flash attention (online softmax, KV axis innermost).
# Refs (leading batch dim squeezed): q (bs, Dqk), k (bs, Dqk), v (bs, Dv).
# --------------------------------------------------------------------------
def _flash_kernel(q_ref, k_ref, v_ref, o_ref, m_scr, l_scr, acc_scr, *, bs):
    kj = pl.program_id(2)

    @pl.when(kj == 0)
    def _init():
        m_scr[...] = jnp.full(m_scr.shape, -jnp.inf, dtype=m_scr.dtype)
        l_scr[...] = jnp.zeros(l_scr.shape, dtype=l_scr.dtype)
        acc_scr[...] = jnp.zeros(acc_scr.shape, dtype=acc_scr.dtype)

    q_start = pl.program_id(1) * bs
    kv_start = kj * bs

    # Skip KV tiles that lie entirely above the causal diagonal of this Q tile.
    @pl.when(kv_start <= q_start + bs - 1)
    def _compute():
        q = q_ref[...]                                       # (bs, Dqk), pre-scaled
        k = k_ref[...]                                       # (bs, Dqk)
        # QK^T without an explicit transpose: contract last dims of both.
        s = lax.dot_general(q, k, (((1,), (1,)), ((), ())),
                            preferred_element_type=jnp.float32)   # (bs, bs)
        row = q_start + lax.broadcasted_iota(jnp.int32, (bs, bs), 0)
        col = kv_start + lax.broadcasted_iota(jnp.int32, (bs, bs), 1)
        s = jnp.where(col > row, _MASK_VALUE, s)

        m_prev = m_scr[...]
        m_new = jnp.maximum(m_prev, jnp.max(s, axis=-1, keepdims=True))
        alpha = jnp.exp(m_prev - m_new)
        p = jnp.exp(s - m_new)
        l_scr[...] = alpha * l_scr[...] + jnp.sum(p, axis=-1, keepdims=True)
        acc_scr[...] = alpha * acc_scr[...] + jnp.dot(
            p.astype(v_ref.dtype), v_ref[...], preferred_element_type=jnp.float32)
        m_scr[...] = m_new

    @pl.when(kj == pl.num_programs(2) - 1)
    def _finalize():
        inv_l = 1.0 / l_scr[...]                             # (bs, 1), exact
        o_ref[...] = (acc_scr[...] * inv_l).astype(o_ref.dtype)


# --------------------------------------------------------------------------
# Wrapper
# --------------------------------------------------------------------------
def attention_pallas(x, wq, wk, wv, d_k=None, *, block_s=256):
    """x: (B, S, d_model); weights in PyTorch Linear layout (out_features, in_features)."""
    B, S, d_model = x.shape
    d_q = wq.shape[0]
    d_kk = wk.shape[0]
    d_v = wv.shape[0]
    assert wq.shape[1] == d_model and wk.shape[1] == d_model and wv.shape[1] == d_model
    assert d_q == d_kk, "d_q must equal d_k for QK^T"
    if d_k is None:
        d_k = d_kk
    assert d_k == d_kk, "scale d_k must match key_weights out_features"
    scale = 1.0 / sqrt(d_k)

    dtype = x.dtype
    itemsize = jnp.dtype(dtype).itemsize

    # Lane-dense padded feature dims (multiples of 128) and sequence tiling.
    Dm = _round_up(d_model, _LANE)
    Dqk = _round_up(d_q, _LANE)
    Dv = _round_up(d_v, _LANE)
    bs = min(block_s, _round_up(S, 8))       # sequence tile (Q == KV tile)
    Sp = _round_up(S, bs)
    n_s = Sp // bs

    # One-time layout plumbing: pad x, pre-transpose + pad weights (zeros are inert).
    xp = jnp.pad(x, ((0, 0), (0, Sp - S), (0, Dm - d_model)))
    wq_t = jnp.pad(wq.T, ((0, Dm - d_model), (0, Dqk - d_q))).astype(dtype)
    wk_t = jnp.pad(wk.T, ((0, Dm - d_model), (0, Dqk - d_kk))).astype(dtype)
    wv_t = jnp.pad(wv.T, ((0, Dm - d_model), (0, Dv - d_v))).astype(dtype)

    # ---------------- projection pass ----------------
    proj_flops = 2 * B * Sp * Dm * (2 * Dqk + Dv)
    proj_bytes = itemsize * (B * Sp * Dm + Dm * (2 * Dqk + Dv) + B * Sp * (2 * Dqk + Dv))
    q, k, v = pl.pallas_call(
        partial(_proj_kernel, scale=scale),
        out_shape=(
            jax.ShapeDtypeStruct((B, Sp, Dqk), dtype),
            jax.ShapeDtypeStruct((B, Sp, Dqk), dtype),
            jax.ShapeDtypeStruct((B, Sp, Dv), dtype),
        ),
        grid_spec=pltpu.PrefetchScalarGridSpec(
            num_scalar_prefetch=0,
            grid=(B, n_s),
            in_specs=[
                pl.BlockSpec((None, bs, Dm), lambda b, i: (b, i, 0)),
                pl.BlockSpec((Dm, Dqk), lambda b, i: (0, 0)),
                pl.BlockSpec((Dm, Dqk), lambda b, i: (0, 0)),
                pl.BlockSpec((Dm, Dv), lambda b, i: (0, 0)),
            ],
            out_specs=[
                pl.BlockSpec((None, bs, Dqk), lambda b, i: (b, i, 0)),
                pl.BlockSpec((None, bs, Dqk), lambda b, i: (b, i, 0)),
                pl.BlockSpec((None, bs, Dv), lambda b, i: (b, i, 0)),
            ],
        ),
        compiler_params=pltpu.CompilerParams(
            dimension_semantics=("parallel", "parallel")),
        cost_estimate=pl.CostEstimate(
            flops=proj_flops, transcendentals=0, bytes_accessed=proj_bytes),
    )(xp, wq_t, wk_t, wv_t)

    # ---------------- flash attention pass ----------------
    flash_flops = 2 * B * Sp * Sp * (Dqk + Dv)
    flash_trans = B * Sp * Sp
    flash_bytes = itemsize * (B * Sp * (2 * Dqk + Dv) * n_s + B * Sp * (Dqk + Dv))
    out = pl.pallas_call(
        partial(_flash_kernel, bs=bs),
        out_shape=jax.ShapeDtypeStruct((B, Sp, Dv), dtype),
        grid_spec=pltpu.PrefetchScalarGridSpec(
            num_scalar_prefetch=0,
            grid=(B, n_s, n_s),
            in_specs=[
                pl.BlockSpec((None, bs, Dqk), lambda b, i, j: (b, i, 0)),
                pl.BlockSpec((None, bs, Dqk), lambda b, i, j: (b, j, 0)),
                pl.BlockSpec((None, bs, Dv), lambda b, i, j: (b, j, 0)),
            ],
            out_specs=pl.BlockSpec((None, bs, Dv), lambda b, i, j: (b, i, 0)),
            scratch_shapes=[
                pltpu.VMEM((bs, 1), jnp.float32),    # running max m
                pltpu.VMEM((bs, 1), jnp.float32),    # running denom l
                pltpu.VMEM((bs, Dv), jnp.float32),   # output accumulator
            ],
        ),
        compiler_params=pltpu.CompilerParams(
            dimension_semantics=("parallel", "parallel", "arbitrary")),
        cost_estimate=pl.CostEstimate(
            flops=flash_flops, transcendentals=flash_trans,
            bytes_accessed=flash_bytes),
    )(q, k, v)

    return out[:, :S, :d_v]


def attention_ref(x, wq, wk, wv, d_k):
    """Pure-JAX reference matching the PyTorch module semantics."""
    q = jnp.einsum("bsd,qd->bsq", x, wq)
    k = jnp.einsum("bsd,kd->bsk", x, wk)
    v = jnp.einsum("bsd,vd->bsv", x, wv)
    s = jnp.einsum("bsq,btq->bst", q, k) / sqrt(d_k)
    S = s.shape[-1]
    mask = jnp.triu(jnp.ones((S, S), dtype=bool), k=1)
    s = jnp.where(mask[None], -jnp.inf, s)
    p = jax.nn.softmax(s, axis=-1)
    return jnp.einsum("bst,btv->bsv", p, v)


if __name__ == "__main__":
    key = jax.random.PRNGKey(0)

    # --- small shapes consistent with the module's forward pass ---
    B, S, d_model = 2, 8, 32
    d_q = d_k = 16
    d_v = 32
    kx, kq, kk_, kv_ = jax.random.split(key, 4)
    x = jax.random.normal(kx, (B, S, d_model), dtype=jnp.float32)
    wq = jax.random.normal(kq, (d_q, d_model), dtype=jnp.float32) * 0.1
    wk = jax.random.normal(kk_, (d_k, d_model), dtype=jnp.float32) * 0.1
    wv = jax.random.normal(kv_, (d_v, d_model), dtype=jnp.float32) * 0.1

    out = attention_pallas(x, wq, wk, wv, d_k)
    out = jax.block_until_ready(out)
    ref = attention_ref(x, wq, wk, wv, d_k)
    assert out.shape == (B, S, d_v)
    assert jnp.allclose(out, ref, atol=1e-4, rtol=1e-4), "mismatch vs reference (small)"

    # --- second check exercising multi-tile flash path, causal skipping,
    #     and sequence / feature padding (still small) ---
    B2, S2, dm2, dq2, dv2 = 2, 320, 48, 32, 80
    k2 = jax.random.split(key, 8)
    x2 = jax.random.normal(k2[4], (B2, S2, dm2), dtype=jnp.float32)
    wq2 = jax.random.normal(k2[5], (dq2, dm2), dtype=jnp.float32) * 0.1
    wk2 = jax.random.normal(k2[6], (dq2, dm2), dtype=jnp.float32) * 0.1
    wv2 = jax.random.normal(k2[7], (dv2, dm2), dtype=jnp.float32) * 0.1

    out2 = attention_pallas(x2, wq2, wk2, wv2, dq2, block_s=128)
    out2 = jax.block_until_ready(out2)
    ref2 = attention_ref(x2, wq2, wk2, wv2, dq2)
    assert out2.shape == (B2, S2, dv2)
    assert jnp.allclose(out2, ref2, atol=1e-4, rtol=1e-4), "mismatch vs reference (tiled)"

    print("KERNEL_OK")
</pallas_src>

<mosaic_0001>
module attributes {stable_mosaic.version = 11 : i64} {
  func.func @_proj_kernel(%arg0: i32, %arg1: i32, %arg2: memref<1x8x128xf32, #tpu.memory_space<vmem>>, %arg3: memref<128x128xf32, #tpu.memory_space<vmem>>, %arg4: memref<128x128xf32, #tpu.memory_space<vmem>>, %arg5: memref<128x128xf32, #tpu.memory_space<vmem>>, %arg6: memref<1x8x128xf32, #tpu.memory_space<vmem>>, %arg7: memref<1x8x128xf32, #tpu.memory_space<vmem>>, %arg8: memref<1x8x128xf32, #tpu.memory_space<vmem>>) attributes {dimension_semantics = [#tpu.dimension_semantics<parallel>, #tpu.dimension_semantics<parallel>], iteration_bounds = array<i64: 2, 1>, scalar_prefetch = 0 : i64, scratch_operands = 0 : i64, tpu.core_type = #tpu.core_type<tc>, window_params = [{transform_indices = @transform_0, window_bounds = array<i64: 1, 8, 128>}, {pipeline_mode = #tpu.pipeline_mode<synchronous>, transform_indices = @transform_1, window_bounds = array<i64: 128, 128>}, {pipeline_mode = #tpu.pipeline_mode<synchronous>, transform_indices = @transform_2, window_bounds = array<i64: 128, 128>}, {pipeline_mode = #tpu.pipeline_mode<synchronous>, transform_indices = @transform_3, window_bounds = array<i64: 128, 128>}, {transform_indices = @transform_4, window_bounds = array<i64: 1, 8, 128>}, {transform_indices = @transform_5, window_bounds = array<i64: 1, 8, 128>}, {transform_indices = @transform_6, window_bounds = array<i64: 1, 8, 128>}]} {
    %c0 = arith.constant 0 : index
    %c0_0 = arith.constant 0 : index
    %c0_1 = arith.constant 0 : index
    %0 = vector.load %arg2[%c0, %c0_0, %c0_1] : memref<1x8x128xf32, #tpu.memory_space<vmem>>, vector<1x8x128xf32>
    %1 = vector.shape_cast %0 : vector<1x8x128xf32> to vector<8x128xf32>
    %c0_2 = arith.constant 0 : index
    %c0_3 = arith.constant 0 : index
    %2 = vector.load %arg3[%c0_2, %c0_3] : memref<128x128xf32, #tpu.memory_space<vmem>>, vector<128x128xf32>
    %cst = arith.constant dense<0.000000e+00> : vector<8x128xf32>
    %3 = tpu.matmul %1, %2, %cst {dimension_numbers = #tpu.dot_dimension_numbers<[1], [0], [0], [1], [0, 0, 1, 1], [], []>} : vector<8x128xf32>, vector<128x128xf32>, vector<8x128xf32> -> vector<8x128xf32>
    %c0_4 = arith.constant 0 : index
    %c0_5 = arith.constant 0 : index
    %4 = vector.load %arg4[%c0_4, %c0_5] : memref<128x128xf32, #tpu.memory_space<vmem>>, vector<128x128xf32>
    %cst_6 = arith.constant dense<0.000000e+00> : vector<8x128xf32>
    %5 = tpu.matmul %1, %4, %cst_6 {dimension_numbers = #tpu.dot_dimension_numbers<[1], [0], [0], [1], [0, 0, 1, 1], [], []>} : vector<8x128xf32>, vector<128x128xf32>, vector<8x128xf32> -> vector<8x128xf32>
    %c0_7 = arith.constant 0 : index
    %c0_8 = arith.constant 0 : index
    %6 = vector.load %arg5[%c0_7, %c0_8] : memref<128x128xf32, #tpu.memory_space<vmem>>, vector<128x128xf32>
    %cst_9 = arith.constant dense<0.000000e+00> : vector<8x128xf32>
    %7 = tpu.matmul %1, %6, %cst_9 {dimension_numbers = #tpu.dot_dimension_numbers<[1], [0], [0], [1], [0, 0, 1, 1], [], []>} : vector<8x128xf32>, vector<128x128xf32>, vector<8x128xf32> -> vector<8x128xf32>
    %cst_10 = arith.constant 2.500000e-01 : f32
    %8 = vector.broadcast %cst_10 : f32 to vector<8x128xf32>
    %9 = arith.mulf %3, %8 : vector<8x128xf32>
    %c0_11 = arith.constant 0 : index
    %c0_12 = arith.constant 0 : index
    %c0_13 = arith.constant 0 : index
    %10 = vector.load %arg6[%c0_11, %c0_12, %c0_13] : memref<1x8x128xf32, #tpu.memory_space<vmem>>, vector<1x8x128xf32>
    %11 = vector.shape_cast %10 : vector<1x8x128xf32> to vector<8x128xf32>
    %12 = vector.shape_cast %9 : vector<8x128xf32> to vector<1x8x128xf32>
    tpu.vector_store %arg6[%c0_11, %c0_12, %c0_13], %12 {strides = array<i32>} : memref<1x8x128xf32, #tpu.memory_space<vmem>>, vector<1x8x128xf32>,
    %c0_14 = arith.constant 0 : index
    %c0_15 = arith.constant 0 : index
    %c0_16 = arith.constant 0 : index
    %13 = vector.load %arg7[%c0_14, %c0_15, %c0_16] : memref<1x8x128xf32, #tpu.memory_space<vmem>>, vector<1x8x128xf32>
    %14 = vector.shape_cast %13 : vector<1x8x128xf32> to vector<8x128xf32>
    %15 = vector.shape_cast %5 : vector<8x128xf32> to vector<1x8x128xf32>
    tpu.vector_store %arg7[%c0_14, %c0_15, %c0_16], %15 {strides = array<i32>} : memref<1x8x128xf32, #tpu.memory_space<vmem>>, vector<1x8x128xf32>,
    %c0_17 = arith.constant 0 : index
    %c0_18 = arith.constant 0 : index
    %c0_19 = arith.constant 0 : index
    %16 = vector.load %arg8[%c0_17, %c0_18, %c0_19] : memref<1x8x128xf32, #tpu.memory_space<vmem>>, vector<1x8x128xf32>
    %17 = vector.shape_cast %16 : vector<1x8x128xf32> to vector<8x128xf32>
    %18 = vector.shape_cast %7 : vector<8x128xf32> to vector<1x8x128xf32>
    tpu.vector_store %arg8[%c0_17, %c0_18, %c0_19], %18 {strides = array<i32>} : memref<1x8x128xf32, #tpu.memory_space<vmem>>, vector<1x8x128xf32>,
    return
  }
  func.func @transform_0(%arg0: i32, %arg1: i32) -> (i32, i32, i32) {
    %c0_i32 = arith.constant 0 : i32
    %c0_i32_0 = arith.constant 0 : i32
    return %arg0, %arg1, %c0_i32 : i32, i32, i32
  }
  func.func @transform_1(%arg0: i32, %arg1: i32) -> (i32, i32) {
    %c0_i32 = arith.constant 0 : i32
    %c0_i32_0 = arith.constant 0 : i32
    %c0_i32_1 = arith.constant 0 : i32
    return %c0_i32, %c0_i32_0 : i32, i32
  }
  func.func @transform_2(%arg0: i32, %arg1: i32) -> (i32, i32) {
    %c0_i32 = arith.constant 0 : i32
    %c0_i32_0 = arith.constant 0 : i32
    %c0_i32_1 = arith.constant 0 : i32
    return %c0_i32, %c0_i32_0 : i32, i32
  }
  func.func @transform_3(%arg0: i32, %arg1: i32) -> (i32, i32) {
    %c0_i32 = arith.constant 0 : i32
    %c0_i32_0 = arith.constant 0 : i32
    %c0_i32_1 = arith.constant 0 : i32
    return %c0_i32, %c0_i32_0 : i32, i32
  }
  func.func @transform_4(%arg0: i32, %arg1: i32) -> (i32, i32, i32) {
    %c0_i32 = arith.constant 0 : i32
    %c0_i32_0 = arith.constant 0 : i32
    return %arg0, %arg1, %c0_i32 : i32, i32, i32
  }
  func.func @transform_5(%arg0: i32, %arg1: i32) -> (i32, i32, i32) {
    %c0_i32 = arith.constant 0 : i32
    %c0_i32_0 = arith.constant 0 : i32
    return %arg0, %arg1, %c0_i32 : i32, i32, i32
  }
  func.func @transform_6(%arg0: i32, %arg1: i32) -> (i32, i32, i32) {
    %c0_i32 = arith.constant 0 : i32
    %c0_i32_0 = arith.constant 0 : i32
    return %arg0, %arg1, %c0_i32 : i32, i32, i32
  }
}

</mosaic_0001>

<bundles_post_ra>
// kernel: tpu_custom_call.1
= control target key start
LH: loop header
LB: loop body
LE: loop exit
PB: predicated region body
PF: predicated region fallthrough
CT: control target
= control target key end

     0   :  { %s1753_s0 = inlined_call_operand.hbm [shape: f32[2,8,128], index: 0, kind: input, shape index: {}]   ;;  %s1754_s1 = inlined_call_operand.hbm [shape: f32[128,128], index: 1, kind: input, shape index: {}]   ;;  %s1755_s2 = inlined_call_operand.hbm [shape: f32[128,128], index: 2, kind: input, shape index: {}]   ;;  %s1756_s3 = inlined_call_operand.hbm [shape: f32[128,128], index: 3, kind: input, shape index: {}]   ;;  %s1757_s4 = inlined_call_operand.hbm [shape: f32[2,8,128], index: 4, kind: output, shape index: {0}]   ;;  %s1758_s5 = inlined_call_operand.hbm [shape: f32[2,8,128], index: 5, kind: output, shape index: {1}]   ;;  %s1759_s6 = inlined_call_operand.hbm [shape: f32[2,8,128], index: 6, kind: output, shape index: {2}]  }
   0x1   :  { %1763 = sst [smem:[#allocation19_spill]] %s1754_s1 }
   0x2   :  { %1764 = sst [smem:[#allocation20_spill]] %s1755_s2 }
   0x3   :  { %12 = vsyncpa [#allocation3], 0 }
   0x4   :  { %14 = vsyncpa [#allocation3 + $0x1], 0 }
   0x5   :  { %15 = vsyncpa [#allocation6], 0 }
   0x6   :  { %16 = vsyncpa [#allocation9], 0 }
   0x7   :  { %17 = vsyncpa [#allocation4], 0 }
   0x8   :  { %19 = vsyncpa [#allocation4 + $0x1], 0 }
   0x9   :  { %20 = vsyncpa [#allocation12], 0 }
   0xa   :  { %22 = vsyncpa [#allocation12 + $0x1], 0  ;;  %s1424_s21 = smov 0   ;;  %s1426_s22 = smov 0  }
   0xb   :  { %s1428_s23 = smov 0   ;;  %s1430_s24 = smov 0  }
   0xc   :  { %s1432_s25 = smov 0   ;;  %s1434_s26 = smov 0  }
   0xd LB: > { %s1455_s27 = sadd.s32 4294967295, %s1376_s26   ;;  %s1762_s28 = sadd.s32 4294967294, %s1376_s26   ;;  %s1376_s26 = sphi %s1434_s26, %s28_s26   ;;  %s1372_s25 = sphi %s1432_s25, %s1787_s25   ;;  %s1368_s24 = sphi %s1430_s24, %s1786_s24   ;;  %s1364_s23 = sphi %s1428_s23, %s1785_s23   ;;  %s1360_s22 = sphi %s1426_s22, %s1784_s22   ;;  %s1356_s21 = sphi %s1424_s21, %s1783_s21  }
   0xe   : > { %p62_p0 = scmp.ne.s32.totalorder %s1360_s22, %s1356_s21  ;;  %p1760_p1 = scmp.eq.s32.totalorder %s1455_s27, 0 }
   0xf   : > { %p157_p3 = scmp.eq.s32.totalorder %s1762_s28, 1  ;;  %p840_p5 = scmp.ge.s32.totalorder %s1376_s26, 1 }
  0x10   : > { %p1466_p4 = por %p1760_p1, %p62_p0  ;;  %p220_p7 = scmp.lt.s32.totalorder %s1376_s26, 3 }
  0x11   : > { %p1471_p6 = por %p157_p3, %p62_p0  ;;  %s1378_s8 = smov [#allocation5]  }
  0x12   : > { %s1765_s29 = scalar_select %p1466_p4, 1, 0 }
  0x13   : > { %s1766_s30 = scalar_select %p1471_p6, 1, 0 }
  0x14   : > { %p1476_p8 = pnand %p840_p5, %p220_p7  ;;  %s232_s9 = sshll.u32 %s1378_s8, 4  ;;  %s233_s9 = int_to_ptr.vmem [resolvable:$true] %s232_s9 }
  0x15   : > { %s1379_s11 = smov [#allocation7]   ;;  %s1380_s13 = smov [#allocation8]  }
  0x16   : > { %p1039_p9 = pneg %p1476_p8  ;;  %s245_s12 = sshll.u32 %s1379_s11, 4  ;;  %s246_s12 = int_to_ptr.vmem [resolvable:$true] %s245_s12 }
  0x17   : > { %s258_s14 = sshll.u32 %s1380_s13, 4  ;;  %s1137_s15 = scalar_lea.vmem %s233_s9, 2048  ;;  %s259_s14 = int_to_ptr.vmem [resolvable:$true] %s258_s14 }
  0x18   : > { %p1485_p11 = pnand %p1039_p9, %p1760_p1  ;;  %p1138_p13 = scmp.ne.s32.totalorder %s233_s9, %s1137_s15 }
  0x19   : > { %p1145_p5 = scmp.lt.s32.totalorder %s233_s9, %s233_s9  ;;  %p1146_p7 = scmp.lt.s32.totalorder %s1137_s15, %s1137_s15 }
  0x1a   : > { %p1128_p12 = pneg %p1485_p11 }
  0x1b   : > { %p1147_p9 = por %p1146_p7, %p1145_p5 }
  0x1c   : > { %p1140_p0 = pnand %p1138_p13, %p1128_p12 }
  0x1e   : > { %p1141_p3 = pneg %p1140_p0 }
  0x20   : > { %p1148_p10 = pnand %p1147_p9, %p1141_p3 }
  0x22   : > { %1151 = shalt.err (!%p1148_p10)
}
  0x23   : > { %s1381_s16 = smov 128   ;;  %s1382_s17 = smov 8  }
  0x24   : > { %s1769_s1 = sld [smem:[#allocation19_spill]]  ;;  %s1163_s20 = scalar_lea.vmem %s246_s12, 2048 }
  0x25   : > { %p1164_p1 = scmp.ne.s32.totalorder %s246_s12, %s1163_s20  ;;  %p1171_p2 = scmp.lt.s32.totalorder %s246_s12, %s246_s12 }
  0x26   : > { %p1172_p6 = scmp.lt.s32.totalorder %s1163_s20, %s1163_s20 }
  0x27   : > { %p1166_p13 = pnand %p1164_p1, %p1128_p12 }
  0x28   : > { %p1173_p5 = por %p1172_p6, %p1171_p2 }
  0x29   : > { %p1167_p0 = pneg %p1166_p13 }
  0x2a   : > { %1042 = dma.hbm_to_vmem [thread:$0]  (!%p1485_p11), %s1769_s1, 2048, %s233_s9, [#allocation6], %s1381_s16, %s1381_s16, %s1382_s17  }
  0x2b   : > { %p1174_p3 = pnand %p1173_p5, %p1167_p0 }
  0x2d   : > { %1177 = shalt.err (!%p1174_p3)
}
  0x2e   : > { %s1770_s2 = sld [smem:[#allocation20_spill]]  ;;  %s1189_s9 = scalar_lea.vmem %s259_s14, 2048 }
  0x2f   : > { %p1190_p10 = scmp.ne.s32.totalorder %s259_s14, %s1189_s9  ;;  %p1197_p9 = scmp.lt.s32.totalorder %s259_s14, %s259_s14 }
  0x30   : > { %p1198_p13 = scmp.lt.s32.totalorder %s1189_s9, %s1189_s9 }
  0x31   : > { %p1192_p7 = pnand %p1190_p10, %p1128_p12 }
  0x32   : > { %p1199_p4 = por %p1198_p13, %p1197_p9 }
  0x33   : > { %p1193_p1 = pneg %p1192_p7 }
  0x34   : > { %1045 = dma.hbm_to_vmem [thread:$0]  (!%p1485_p11), %s1770_s2, 2048, %s246_s12, [#allocation6], %s1381_s16, %s1381_s16, %s1382_s17  }
  0x35   : > { %p1200_p2 = pnand %p1199_p4, %p1193_p1 }
  0x37   : > { %1203 = shalt.err (!%p1200_p2)
}
  0x38   : > { %1048 = dma.hbm_to_vmem [thread:$0]  (!%p1485_p11), %s1756_s3, 2048, %s259_s14, [#allocation9], %s1381_s16, %s1381_s16, %s1382_s17  }
  0x39   : > { %s49_s12 = sadd.s32 1, %s1364_s23  ;;  %s40_s18 = sadd.s32 1, %s1372_s25 }
  0x3a   : > { %p56_p4 = scmp.ne.s32.totalorder %s1364_s23, %s1360_s22  ;;  %p42_p6 = scmp.ge.s32.totalorder %s40_s18, 2 }
  0x3b   : > { %p57_p12 = scmp.eq.s32.totalorder %s1376_s26, 0  ;;  %p1771_p0 = scmp.eq.s32.totalorder %s1455_s27, 1 }
  0x3c   : > { %p1066_p3 = scmp.lt.s32.totalorder %s1376_s26, 2  ;;  %s1789_s18 = smov (%p42_p6, %s40_s18), 0 }
  0x3d   : > { %p1522_p5 = por %p1771_p0, %p56_p4  ;;  %p58_p10 = por %p57_p12, %p56_p4 }
  0x3e   : > { %s272_s19 = sand.u32 1, %s1364_s23   ;;  %s44_s20 = ssub.s32 %s1372_s25, %s1789_s18 }
  0x3f   : > { %p47_p7 = scmp.eq.s32.totalorder %s44_s20, 0  ;;  %s845_s14 = sshll.u32 %s272_s19, 3 }
  0x40   : > { %s846_s16 = sshll.u32 %s1372_s25, 7  ;;  %s276_s13 = scalar_lea.vmem [#allocation2], %s845_s14 }
  0x41   : > { %s1534_s17 = scalar_select %p47_p7, %s1364_s23, %s49_s12  }
  0x42   : > { %s282_s9 = scalar_lea.hbm %s1753_s0, %s846_s16  ;;  %s284_s15 = sshll.u32 %s276_s13, 4  ;;  %s285_s15 = int_to_ptr.vmem [resolvable:$true] %s284_s15 }
  0x43   : > { %p1541_p11 = pnand %p1066_p3, %p58_p10  ;;  %s273_s1 = scalar_lea.sflag [#allocation3], %s272_s19 }
  0x44   : > { %s1217_s20 = scalar_lea.vmem %s285_s15, 128  ;;  %s1383_s12 = smov [#allocation2]  }
  0x45   : > { %p1206_p1 = pneg %p1541_p11  ;;  %p1218_p9 = scmp.ne.s32.totalorder %s285_s15, %s1217_s20 }
  0x46   : > { %s1222_s2 = sshll.u32 %s1383_s12, 4  ;;  %s1223_s2 = int_to_ptr.vmem [resolvable:$false] %s1222_s2 }
  0x47   : > { %p1220_p13 = pnand %p1218_p9, %p1206_p1  ;;  %s1224_s16 = scalar_lea.vmem %s1223_s2, 256 }
  0x48   : > { %p1225_p4 = scmp.lt.s32.totalorder %s285_s15, %s1223_s2  ;;  %p1226_p6 = scmp.lt.s32.totalorder %s1224_s16, %s1217_s20 }
  0x49   : > { %p1221_p2 = pneg %p1220_p13 }
  0x4a   : > { %p1227_p12 = por %p1226_p6, %p1225_p4 }
  0x4c   : > { %p1228_p0 = pnand %p1227_p12, %p1221_p2 }
  0x4e   : > { %1231 = shalt.err (!%p1228_p0)
}
  0x4f   : > { %1052 = dma.hbm_to_vmem [thread:$0]  (!%p1541_p11), %s282_s9, 128, %s285_s15, %s273_s1  }
  0x50   : > { %293 = sbr.rel (%p1476_p8) target bundleno = 381 (0x17d), region = 36  ;;  %s1552_s19 = sand.u32 (!%p1476_p8), 1, %s1360_s22  }
  0x51   : > { %s1555_s14 = sshll.u32 (!%p1476_p8), %s1552_s19, 3  ;;  %s296_s2 = scalar_lea.sflag (!%p1476_p8), [#allocation3], %s1552_s19 }
  0x52   : > { %s299_s8 = scalar_lea.vmem (!%p1476_p8), [#allocation2], %s1555_s14  ;;  %p1774_p3 = scmp.ne.s32.totalorder (!%p1476_p8), %s1765_s29, 0 }
  0x55   : > { %1335 = dma.done.wait (%p1774_p3), %s296_s2, 128  }
  0x56   : > { %1337 = vsyncadd (%p1774_p3), %s296_s2, 4294967168  ;;  %p1775_p10 = scmp.eq.s32.totalorder %s1455_s27, 0 }
  0x58   : > { %1339 = dma.done.wait (%p1775_p10), [#allocation6], 4096   ;;  %p1776_p8 = pmov %p1775_p10 }
  0x5a   : > { %1341 = vsyncadd (%p1776_p8), [#allocation6], 4294963200  ;;  %p1777_p7 = pmov %p1776_p8 }
  0x5c   : > { %1343 = dma.done.wait (%p1777_p7), [#allocation9], 2048   ;;  %p1778_p11 = pmov %p1777_p7 }
  0x5d   : > { %v1384_v0 = vmov 0.0   ;;  %vm1385_vm0 = vmmov 0   ;;  %v366_v1 = vld [vmem:[#allocation5 + $0x78] sm:$0xff]  ;;  %v365_v2 = vld [vmem:[#allocation5 + $0x70] sm:$0xff]  ;;  %v364_v3 = vld [vmem:[#allocation5 + $0x68] sm:$0xff]  ;;  %s1633_s1 = sshll.u32 %s1368_s24, 7 }
  0x5e   : > { %1345 = vsyncadd (%p1778_p11), [#allocation9], 4294965248  ;;  %914 = vmatprep.subr.mxu0 %v1384_v0  ;;  %949 = vmatprep.subr.mxu1 %v1384_v0  ;;  %v363_v4 = vld [vmem:[#allocation5 + $0x60] sm:$0xff]  ;;  %v452_v5 = vld [vmem:[#allocation7 + $0x78] sm:$0xff]  ;;  %s335_s28 = scalar_lea.vmem [#allocation10], %s1555_s14  ;;  %s342_s7 = scalar_lea.vmem [#allocation11], %s1555_s14 }
  0x5f   : > { %946 = vmatprep.mubr.msk.f32.mxu0 %vm1385_vm0, %v1384_v0  ;;  %981 = vmatprep.mubr.msk.f32.mxu1 %vm1385_vm0, %v1384_v0  ;;  %v362_v6 = vld [vmem:[#allocation5 + $0x58] sm:$0xff]  ;;  %v451_v7 = vld [vmem:[#allocation7 + $0x70] sm:$0xff]  ;;  %v450_v8 = vld [vmem:[#allocation7 + $0x68] sm:$0xff]  ;;  %s638_s29 = sshll.u32 %s335_s28, 4  ;;  %s652_s11 = sshll.u32 %s342_s7, 4  ;;  %s1645_s29 = int_to_ptr.vmem [resolvable:$true] %s638_s29  ;;  %s1648_s11 = int_to_ptr.vmem [resolvable:$true] %s652_s11 }
  0x60   : > { %915 = vmatpush3.msra.mxu0 %v366_v1  ;;  %950 = vmatpush3.msra.mxu1 %v452_v5  ;;  %v361_v9 = vld [vmem:[#allocation5 + $0x50] sm:$0xff]  ;;  %v449_v10 = vld [vmem:[#allocation7 + $0x60] sm:$0xff]  ;;  %v360_v11 = vld [vmem:[#allocation5 + $0x48] sm:$0xff]  ;;  %s1643_s15 = scalar_lea.hbm %s1757_s4, %s1633_s1  ;;  %s614_s20 = scalar_lea.sflag [#allocation4], %s1552_s19 }
  0x61   : > { %916 = vmatprep.subr.mxu0 %v1384_v0  ;;  %951 = vmatprep.subr.mxu1 %v1384_v0  ;;  %v448_v12 = vld [vmem:[#allocation7 + $0x58] sm:$0xff]  ;;  %v359_v13 = vld [vmem:[#allocation5 + $0x40] sm:$0xff]  ;;  %v447_v14 = vld [vmem:[#allocation7 + $0x50] sm:$0xff]  ;;  %s1232_s12 = scalar_lea.vmem %s1645_s29, 128  ;;  %s1386_s16 = smov [#allocation10]  }
  0x62   : > { %917 = vmatpush3.msra.mxu0 %v365_v2  ;;  %952 = vmatpush3.msra.mxu1 %v451_v7  ;;  %v358_v15 = vld [vmem:[#allocation5 + $0x38] sm:$0xff]  ;;  %v446_v16 = vld [vmem:[#allocation7 + $0x48] sm:$0xff]  ;;  %v357_v17 = vld [vmem:[#allocation5 + $0x30] sm:$0xff]  ;;  %p1233_p1 = scmp.ne.s32.totalorder %s1645_s29, %s1232_s12  ;;  %s1236_s2 = sshll.u32 %s1386_s16, 4  ;;  %s1237_s2 = int_to_ptr.vmem [resolvable:$false] %s1236_s2 }
  0x63   : > { %918 = vmatprep.subr.mxu0 %v1384_v0  ;;  %953 = vmatprep.subr.mxu1 %v1384_v0  ;;  %v445_v18 = vld [vmem:[#allocation7 + $0x40] sm:$0xff]  ;;  %v356_v19 = vld [vmem:[#allocation5 + $0x28] sm:$0xff]  ;;  %v444_v20 = vld [vmem:[#allocation7 + $0x38] sm:$0xff]  ;;  %p1239_p2 = scmp.lt.s32.totalorder %s1645_s29, %s1237_s2 }
  0x64   : > { %919 = vmatpush3.msra.mxu0 %v364_v3  ;;  %954 = vmatpush3.msra.mxu1 %v450_v8  ;;  %v355_v21 = vld [vmem:[#allocation5 + $0x20] sm:$0xff]  ;;  %v443_v22 = vld [vmem:[#allocation7 + $0x30] sm:$0xff]  ;;  %v354_v23 = vld [vmem:[#allocation5 + $0x18] sm:$0xff]  ;;  %p1234_p9 = pnand %p1233_p1, %p1522_p5 }
  0x65   : > { %920 = vmatprep.subr.mxu0 %v1384_v0  ;;  %955 = vmatprep.subr.mxu1 %v1384_v0  ;;  %v442_v24 = vld [vmem:[#allocation7 + $0x28] sm:$0xff]  ;;  %v353_v25 = vld [vmem:[#allocation5 + $0x10] sm:$0xff]  ;;  %v441_v26 = vld [vmem:[#allocation7 + $0x20] sm:$0xff] }
  0x66   : > { %921 = vmatpush3.msra.mxu0 %v363_v4  ;;  %956 = vmatpush3.msra.mxu1 %v449_v10  ;;  %v352_v27 = vld [vmem:[#allocation5 + $0x8] sm:$0xff]  ;;  %v440_v28 = vld [vmem:[#allocation7 + $0x18] sm:$0xff]  ;;  %v351_v29 = vld [vmem:[#allocation5] sm:$0xff]  ;;  %p1235_p13 = pneg %p1234_p9 }
  0x67   : > { %922 = vmatprep.subr.mxu0 %v1384_v0  ;;  %957 = vmatprep.subr.mxu1 %v1384_v0  ;;  %v1604_v30 = vld [vmem:[%s299_s8] sm:$0xff]  ;;  %v438_v34 = vld [vmem:[#allocation7 + $0x8] sm:$0xff]  ;;  %v437_v36 = vld [vmem:[#allocation7] sm:$0xff]  ;;  %s1238_s8 = scalar_lea.vmem %s1237_s2, 256 }
  0x68   : > { %923 = vmatpush3.msra.mxu0 %v362_v6  ;;  %958 = vmatpush3.msra.mxu1 %v448_v12  ;;  %v538_v31 = vld [vmem:[#allocation8 + $0x78] sm:$0xff]  ;;  %v439_v32 = vld [vmem:[#allocation7 + $0x10] sm:$0xff]  ;;  %v536_v35 = vld [vmem:[#allocation8 + $0x68] sm:$0xff]  ;;  %p1240_p4 = scmp.lt.s32.totalorder %s1238_s8, %s1232_s12 }
  0x69   : > { %924 = vmatprep.subr.mxu0 %v1384_v0  ;;  %959 = vmatprep.subr.mxu1 %v1384_v0  ;;  %v537_v33 = vld [vmem:[#allocation8 + $0x70] sm:$0xff]  ;;  %v535_v37 = vld [vmem:[#allocation8 + $0x60] sm:$0xff]  ;;  %v534_v38 = vld [vmem:[#allocation8 + $0x58] sm:$0xff] }
  0x6a   : > { %925 = vmatpush3.msra.mxu0 %v361_v9  ;;  %960 = vmatpush3.msra.mxu1 %v447_v14  ;;  %v533_v39 = vld [vmem:[#allocation8 + $0x50] sm:$0xff]  ;;  %v532_v40 = vld [vmem:[#allocation8 + $0x48] sm:$0xff]  ;;  %v531_v41 = vld [vmem:[#allocation8 + $0x40] sm:$0xff]  ;;  %p1241_p6 = por %p1240_p4, %p1239_p2 }
  0x6b   : > { %926 = vmatprep.subr.mxu0 %v1384_v0  ;;  %961 = vmatprep.subr.mxu1 %v1384_v0  ;;  %v530_v42 = vld [vmem:[#allocation8 + $0x38] sm:$0xff]  ;;  %v529_v43 = vld [vmem:[#allocation8 + $0x30] sm:$0xff]  ;;  %v528_v44 = vld [vmem:[#allocation8 + $0x28] sm:$0xff] }
  0x6c   : > { %927 = vmatpush3.msra.mxu0 %v360_v11  ;;  %962 = vmatpush3.msra.mxu1 %v446_v16  ;;  %v527_v45 = vld [vmem:[#allocation8 + $0x20] sm:$0xff]  ;;  %v526_v46 = vld [vmem:[#allocation8 + $0x18] sm:$0xff]  ;;  %v525_v47 = vld [vmem:[#allocation8 + $0x10] sm:$0xff]  ;;  %p1242_p12 = pnand %p1241_p6, %p1235_p13 }
  0x6d   : > { %928 = vmatprep.subr.mxu0 %v1384_v0  ;;  %963 = vmatprep.subr.mxu1 %v1384_v0  ;;  %v524_v48 = vld [vmem:[#allocation8 + $0x8] sm:$0xff]  ;;  %v523_v49 = vld [vmem:[#allocation8] sm:$0xff] }
  0x6e   : > { %929 = vmatpush3.msra.mxu0 %v359_v13  ;;  %964 = vmatpush3.msra.mxu1 %v445_v18 }
  0x6f   : > { %930 = vmatprep.subr.mxu0 %v1384_v0  ;;  %965 = vmatprep.subr.mxu1 %v1384_v0 }
  0x70   : > { %931 = vmatpush3.msra.mxu0 %v358_v15  ;;  %966 = vmatpush3.msra.mxu1 %v444_v20 }
  0x71   : > { %932 = vmatprep.subr.mxu0 %v1384_v0  ;;  %967 = vmatprep.subr.mxu1 %v1384_v0 }
  0x72   : > { %933 = vmatpush3.msra.mxu0 %v357_v17  ;;  %968 = vmatpush3.msra.mxu1 %v443_v22 }
  0x73   : > { %934 = vmatprep.subr.mxu0 %v1384_v0  ;;  %969 = vmatprep.subr.mxu1 %v1384_v0 }
  0x74   : > { %935 = vmatpush3.msra.mxu0 %v356_v19  ;;  %970 = vmatpush3.msra.mxu1 %v442_v24 }
  0x75   : > { %936 = vmatprep.subr.mxu0 %v1384_v0  ;;  %971 = vmatprep.subr.mxu1 %v1384_v0 }
  0x76   : > { %937 = vmatpush3.msra.mxu0 %v355_v21  ;;  %972 = vmatpush3.msra.mxu1 %v441_v26 }
  0x77   : > { %938 = vmatprep.subr.mxu0 %v1384_v0  ;;  %973 = vmatprep.subr.mxu1 %v1384_v0 }
  0x78   : > { %939 = vmatpush3.msra.mxu0 %v354_v23  ;;  %974 = vmatpush3.msra.mxu1 %v440_v28 }
  0x79   : > { %940 = vmatprep.subr.mxu0 %v1384_v0  ;;  %975 = vmatprep.subr.mxu1 %v1384_v0 }
  0x7a   : > { %941 = vmatpush3.msra.mxu0 %v353_v25  ;;  %976 = vmatpush3.msra.mxu1 %v439_v32 }
  0x7b   : > { %942 = vmatprep.subr.mxu0 %v1384_v0  ;;  %977 = vmatprep.subr.mxu1 %v1384_v0 }
  0x7c   : > { %943 = vmatpush3.msra.mxu0 %v352_v27  ;;  %978 = vmatpush3.msra.mxu1 %v438_v34 }
  0x7d   : > { %944 = vmatprep.subr.mxu0 %v1384_v0  ;;  %979 = vmatprep.subr.mxu1 %v1384_v0 }
  0x7e   : > { %945 = vmatpush3.msra.mxu0 %v351_v29  ;;  %980 = vmatpush3.msra.mxu1 %v437_v36 }
  0x7f   : > { %947 = vmatmul.mubr.f32.vlgmr.msra.gmra.mxu0 %v1604_v30  ;;  %984 = vmatprep.subr.mxu0 %v1384_v0 }
  0x80   : > { %985 = vmatpush3.msra.mxu0 %v538_v31  ;;  %982 = vmatmul.mubr.f32.vlgmr.msra.gmra.mxu1 %v1604_v30 }
  0x81   : > { %986 = vmatprep.subr.mxu0 %v1384_v0  ;;  %1016 = vmatprep.mubr.msk.f32.mxu0 %vm1385_vm0, %v1384_v0 }
  0x82   : > { %987 = vmatpush3.msra.mxu0 %v537_v33 }
  0x83   : > { %988 = vmatprep.subr.mxu0 %v1384_v0 }
  0x84   : > { %989 = vmatpush3.msra.mxu0 %v536_v35 }
  0x85   : > { %990 = vmatprep.subr.mxu0 %v1384_v0 }
  0x86   : > { %991 = vmatpush3.msra.mxu0 %v535_v37 }
  0x87   : > { %992 = vmatprep.subr.mxu0 %v1384_v0 }
  0x88   : > { %993 = vmatpush3.msra.mxu0 %v534_v38 }
  0x89   : > { %994 = vmatprep.subr.mxu0 %v1384_v0 }
  0x8a   : > { %995 = vmatpush3.msra.mxu0 %v533_v39 }
  0x8b   : > { %996 = vmatprep.subr.mxu0 %v1384_v0 }
  0x8c   : > { %997 = vmatpush3.msra.mxu0 %v532_v40 }
  0x8d   : > { %998 = vmatprep.subr.mxu0 %v1384_v0 }
  0x8e   : > { %999 = vmatpush3.msra.mxu0 %v531_v41 }
  0x8f   : > { %1000 = vmatprep.subr.mxu0 %v1384_v0 }
  0x90   : > { %1001 = vmatpush3.msra.mxu0 %v530_v42 }
  0x91   : > { %1002 = vmatprep.subr.mxu0 %v1384_v0 }
  0x92   : > { %1003 = vmatpush3.msra.mxu0 %v529_v43 }
  0x93   : > { %1004 = vmatprep.subr.mxu0 %v1384_v0 }
  0x94   : > { %1005 = vmatpush3.msra.mxu0 %v528_v44 }
  0x95   : > { %1006 = vmatprep.subr.mxu0 %v1384_v0 }
  0x96   : > { %1007 = vmatpush3.msra.mxu0 %v527_v45 }
  0x97   : > { %1008 = vmatprep.subr.mxu0 %v1384_v0 }
  0x98   : > { %1009 = vmatpush3.msra.mxu0 %v526_v46 }
  0x99   : > { %1010 = vmatprep.subr.mxu0 %v1384_v0 }
  0x9a   : > { %1011 = vmatpush3.msra.mxu0 %v525_v47 }
  0x9b   : > { %1012 = vmatprep.subr.mxu0 %v1384_v0 }
  0x9c   : > { %1013 = vmatpush3.msra.mxu0 %v524_v48 }
  0x9d   : > { %1014 = vmatprep.subr.mxu0 %v1384_v0 }
  0x9e   : > { %1015 = vmatpush3.msra.mxu0 %v523_v49 }
  0x9f   : > { %1017 = vmatmul.mubr.f32.vlgmr.msra.gmra.mxu0 %v1604_v30 }
 0x13f   : > { %v433_v50 = vpop.f32.mrf.mxu0 }
 0x140   : > { %v609_v51 = vmul.f32 0.25, %v433_v50 }
 0x141   : > { %v948_v52 = vpop.f32.mrf.mxu0 }
 0x142   : > { %610 = vst [vmem:[%s335_s28] sm:$0xff] %v609_v51 }
 0x143   : > { %1245 = shalt.err (!%p1242_p12)
}
 0x144   : > { %s1246_s28 = scalar_lea.hbm %s1643_s15, 128  ;;  %s1250_s13 = scalar_lea.hbm %s1757_s4, 256 }
 0x145   : > { %p1247_p0 = scmp.ne.s32.totalorder %s1643_s15, %s1246_s28  ;;  %p1251_p8 = scmp.lt.s32.totalorder %s1643_s15, %s1757_s4 }
 0x146   : > { %p1252_p7 = scmp.lt.s32.totalorder %s1250_s13, %s1246_s28 }
 0x147   : > { %p1248_p3 = pnand %p1247_p0, %p1522_p5 }
 0x148   : > { %p1253_p11 = por %p1252_p7, %p1251_p8 }
 0x149   : > { %p1249_p10 = pneg %p1248_p3 }
 0x14b   : > { %p1254_p1 = pnand %p1253_p11, %p1249_p10 }
 0x14d   : > { %1257 = shalt.err (!%p1254_p1)
}
 0x14e   : > { %1033 = dma.vmem_to_hbm [thread:$0]  (%p1522_p5), %s1645_s29, 128, %s1643_s15, %s614_s20   ;;  %v519_v53 = vpop.f32.mrf.mxu1 }
 0x14f   : > { %s1675_s24 = scalar_lea.hbm %s1758_s5, %s1633_s1  ;;  %611 = vst [vmem:[%s342_s7] sm:$0xff] %v519_v53  ;;  %s1779_s8 = sand.u32 1, %s1455_s27  }
 0x150   : > { %v983_v54 = vpop.f32.mrf.mxu1  ;;  %s1681_s28 = scalar_lea.sflag [#allocation12], %s1779_s8  ;;  %s1258_s19 = scalar_lea.vmem %s1648_s11, 128 }
 0x151   : > { %p1259_p9 = scmp.ne.s32.totalorder %s1648_s11, %s1258_s19  ;;  %s1387_s9 = smov [#allocation11]  }
 0x152   : > { %s1262_s13 = sshll.u32 %s1387_s9, 4  ;;  %s1263_s13 = int_to_ptr.vmem [resolvable:$false] %s1262_s13 }
 0x153   : > { %p1260_p13 = pnand %p1259_p9, %p1522_p5  ;;  %s1264_s29 = scalar_lea.vmem %s1263_s13, 256 }
 0x154   : > { %p1265_p4 = scmp.lt.s32.totalorder %s1648_s11, %s1263_s13  ;;  %p1266_p6 = scmp.lt.s32.totalorder %s1264_s29, %s1258_s19 }
 0x155   : > { %p1261_p2 = pneg %p1260_p13 }
 0x156   : > { %p1267_p12 = por %p1266_p6, %p1265_p4 }
 0x158   : > { %p1268_p0 = pnand %p1267_p12, %p1261_p2 }
 0x15a   : > { %1271 = shalt.err (!%p1268_p0)
}
 0x15b   : > { %s1272_s27 = scalar_lea.hbm %s1675_s24, 128  ;;  %s1276_s20 = scalar_lea.hbm %s1758_s5, 256 }
 0x15c   : > { %p1273_p3 = scmp.ne.s32.totalorder %s1675_s24, %s1272_s27  ;;  %p1277_p7 = scmp.lt.s32.totalorder %s1675_s24, %s1758_s5 }
 0x15d   : > { %p1278_p11 = scmp.lt.s32.totalorder %s1276_s20, %s1272_s27 }
 0x15e   : > { %p1274_p10 = pnand %p1273_p3, %p1522_p5 }
 0x15f   : > { %p1279_p1 = por %p1278_p11, %p1277_p7 }
 0x160   : > { %p1275_p8 = pneg %p1274_p10 }
 0x162   : > { %p1280_p9 = pnand %p1279_p1, %p1275_p8 }
 0x164   : > { %1283 = shalt.err (!%p1280_p9)
}
 0x165   : > { %1034 = dma.vmem_to_hbm [thread:$0]  (%p1522_p5), %s1648_s11, 128, %s1675_s24, %s1681_s28   ;;  %v605_v55 = vpop.f32.mrf.mxu0 }
 0x166   : > { %s349_s2 = scalar_lea.vmem [#allocation13], %s1555_s14  ;;  %s664_s13 = scalar_lea.hbm %s1759_s6, %s1633_s1 }
 0x167   : > { %s666_s8 = sshll.u32 %s349_s2, 4  ;;  %612 = vst [vmem:[%s349_s2] sm:$0xff] %v605_v55  ;;  %v1018_v56 = vpop.f32.mrf.mxu0  ;;  %s1388_s11 = smov [#allocation13]   ;;  %s1705_s8 = int_to_ptr.vmem [resolvable:$true] %s666_s8 }
 0x168   : > { %s1284_s29 = scalar_lea.vmem %s1705_s8, 128  ;;  %s1288_s14 = sshll.u32 %s1388_s11, 4  ;;  %s1289_s14 = int_to_ptr.vmem [resolvable:$false] %s1288_s14 }
 0x169   : > { %p1285_p13 = scmp.ne.s32.totalorder %s1705_s8, %s1284_s29  ;;  %s1290_s24 = scalar_lea.vmem %s1289_s14, 256 }
 0x16a   : > { %p1291_p6 = scmp.lt.s32.totalorder %s1705_s8, %s1289_s14  ;;  %p1292_p12 = scmp.lt.s32.totalorder %s1290_s24, %s1284_s29 }
 0x16b   : > { %p1286_p2 = pnand %p1285_p13, %p1522_p5 }
 0x16c   : > { %p1293_p0 = por %p1292_p12, %p1291_p6 }
 0x16d   : > { %p1287_p4 = pneg %p1286_p2 }
 0x16f   : > { %p1294_p3 = pnand %p1293_p0, %p1287_p4 }
 0x171   : > { %1297 = shalt.err (!%p1294_p3)
}
 0x172   : > { %s1298_s27 = scalar_lea.hbm %s664_s13, 128  ;;  %s1302_s15 = scalar_lea.hbm %s1759_s6, 256 }
 0x173   : > { %p1299_p10 = scmp.ne.s32.totalorder %s664_s13, %s1298_s27  ;;  %p1303_p11 = scmp.lt.s32.totalorder %s664_s13, %s1759_s6 }
 0x174   : > { %p1304_p1 = scmp.lt.s32.totalorder %s1302_s15, %s1298_s27 }
 0x175   : > { %p1300_p8 = pnand %p1299_p10, %p1522_p5 }
 0x176   : > { %p1305_p9 = por %p1304_p1, %p1303_p11 }
 0x177   : > { %p1301_p7 = pneg %p1300_p8 }
 0x179   : > { %p1306_p13 = pnand %p1305_p9, %p1301_p7 }
 0x17b   : > { %1309 = shalt.err (!%p1306_p13)
}
 0x17c   : > { %1035 = dma.vmem_to_hbm [thread:$0]  (%p1522_p5), %s1705_s8, 128, %s664_s13, %s1681_s28  }
 0x17d PF: > { %s678_s12 = sand.u32 1, %s1356_s21   ;;  %p1780_p2 = scmp.ne.s32.totalorder %s1766_s30, 0 }
 0x17e   : > { %p1781_p4 = scmp.ge.s32.totalorder %s1376_s26, 2  ;;  %s679_s2 = scalar_lea.sflag [#allocation4], %s678_s12 }
 0x180   : > { %p1054_p6 = pnand %p1781_p4, %p1780_p2 }
 0x182   : > { %p1055_p12 = pneg %p1054_p6 }
 0x184   : > { %1347 = dma.done.wait (%p1055_p12), %s679_s2, 128  }
 0x185   : > { %1349 = vsyncadd (%p1055_p12), %s679_s2, 4294967168  ;;  %s1782_s19 = sadd.s32 4294967294, %s1376_s26  }
 0x186   : > { %s687_s9 = sand.u32 1, %s1782_s19  }
 0x187   : > { %s688_s29 = scalar_lea.sflag [#allocation12], %s687_s9 }
 0x188   : > { %1351 = dma.done.wait (%p1055_p12), %s688_s29, 256  }
 0x189   : > { %1353 = vsyncadd (%p1055_p12), %s688_s29, 4294967040  ;;  %s28_s26 = sadd.s32 1, %s1376_s26   ;;  %s1783_s21 = smov %s1360_s22 }
 0x18a   : > { %p25_p5 = scmp.ge.s32.totalorder %s28_s26, 4   ;;  %s1784_s22 = smov %s1364_s23 }
 0x18b   : > { %s1785_s23 = smov %s1534_s17  ;;  %s1786_s24 = smov %s1372_s25 }
 0x18c   : > { %s1787_s25 = smov %s1789_s18  ;;  %27 = sbr.rel (!%p25_p5) target bundleno = 13 (0xd), region = 125 }
 0x191   :  { %702 = vsyncpa [#allocation3], 1 }
 0x192   :  { %704 = vsyncpa [#allocation3 + $0x1], 1 }
 0x193   :  { %705 = vsyncpa [#allocation6], 1 }
 0x194   :  { %706 = vsyncpa [#allocation9], 1 }
 0x195   :  { %707 = vsyncpa [#allocation4], 1 }
 0x196   :  { %709 = vsyncpa [#allocation4 + $0x1], 1 }
 0x197   :  { %710 = vsyncpa [#allocation12], 1 }
 0x198   :  { %712 = vsyncpa [#allocation12 + $0x1], 1 }

</bundles_post_ra>
